<compile_context>
chip_gen: v7x
topology: tpu7x:2x2x1
jax: 0.10.0
libtpu: 0.0.40
codegen_flags: <defaults>
</compile_context>

<pallas_src>
import functools

import jax
import jax.numpy as jnp
from jax.experimental import pallas as pl
from jax.experimental.pallas import tpu as pltpu


def _round_up(x, m):
    return ((x + m - 1) // m) * m


def _conv_bn_relu_kernel(p_ref, w_ref, sb_ref, o_ref, *, relu):
    """One (row-tile, cout-tile) of one image: GEMM + folded BN + ReLU.

    p_ref : (1, TILE_M, K_pad)   im2col patches (compute dtype)
    w_ref : (K_pad, TILE_C)      im2col-folded conv weights (compute dtype)
    sb_ref: (2, TILE_C)          row 0 = BN scale, row 1 = BN bias (f32)
    o_ref : (1, TILE_M, TILE_C)  lane-dense output tile (TILE_C % 128 == 0)
    """
    acc = jnp.dot(p_ref[0], w_ref[...], preferred_element_type=jnp.float32)
    y = acc * sb_ref[0:1, :] + sb_ref[1:2, :]          # f32 epilogue
    if relu:
        y = jnp.maximum(y, 0.0)
    o_ref[0] = y.astype(o_ref.dtype)


def basic_conv(x_nchw, weight, gamma=None, beta=None, running_mean=None,
               running_var=None, *, stride=1, padding=0, eps=1e-5,
               relu=True, bn=True, compute_dtype=jnp.bfloat16):
    """BasicConv forward.  x_nchw: (N, Cin, H, W); weight: (Cout, Cin, KH, KW)."""
    N, Cin, H, W = x_nchw.shape
    Cout, Cin_w, KH, KW = weight.shape
    assert Cin_w == Cin, "groups=1 only"

    # ---- glue in plain JAX: layout, zero pad, im2col, BN fold, lane pad ----
    x_nhwc = jnp.transpose(x_nchw, (0, 2, 3, 1))                     # (N,H,W,Cin)
    x_pad = jnp.pad(x_nhwc, ((0, 0), (padding, padding),
                             (padding, padding), (0, 0)))
    Hp, Wp = H + 2 * padding, W + 2 * padding
    Ho = (Hp - KH) // stride + 1
    Wo = (Wp - KW) // stride + 1

    # im2col: (N, Ho*Wo, KH*KW*Cin) -- tap/channel order matches the weight
    # reshape below, so the conv is a single GEMM per output row block.
    cols = []
    for kh in range(KH):
        for kw in range(KW):
            cols.append(x_pad[:, kh:kh + (Ho - 1) * stride + 1:stride,
                              kw:kw + (Wo - 1) * stride + 1:stride, :])
    patches = jnp.concatenate(cols, axis=-1).reshape(N, Ho * Wo, KH * KW * Cin)

    K = KH * KW * Cin
    M = Ho * Wo

    K_pad = _round_up(K, 128)                   # MXU / lane sized contraction
    Cout_pad = _round_up(Cout, 128)             # lane-dense output
    TILE_M = min(128, _round_up(M, 8))          # row tile (sublane multiple)
    M_pad = _round_up(M, TILE_M)
    TILE_C = 256 if Cout_pad % 256 == 0 else 128

    patches = jnp.pad(patches, ((0, 0), (0, M_pad - M), (0, K_pad - K)))
    patches = patches.astype(compute_dtype)

    w2d = jnp.transpose(weight, (2, 3, 1, 0)).reshape(K, Cout)       # (K, Cout)
    w2d = jnp.pad(w2d, ((0, K_pad - K), (0, Cout_pad - Cout)))
    w2d = w2d.astype(compute_dtype)

    if bn:
        scale = gamma / jnp.sqrt(running_var + eps)
        bias = beta - running_mean * scale
    else:
        scale = jnp.ones((Cout,), jnp.float32)
        bias = jnp.zeros((Cout,), jnp.float32)
    sb = jnp.stack([scale, bias]).astype(jnp.float32)                # (2, Cout)
    sb = jnp.pad(sb, ((0, 0), (0, Cout_pad - Cout)))

    grid = (N, M_pad // TILE_M, Cout_pad // TILE_C)
    kernel = functools.partial(_conv_bn_relu_kernel, relu=relu)

    out = pl.pallas_call(
        kernel,
        out_shape=jax.ShapeDtypeStruct((N, M_pad, Cout_pad), x_nchw.dtype),
        grid_spec=pltpu.PrefetchScalarGridSpec(
            num_scalar_prefetch=0,
            grid=grid,
            in_specs=[
                pl.BlockSpec((1, TILE_M, K_pad), lambda n, m, c: (n, m, 0)),
                pl.BlockSpec((K_pad, TILE_C), lambda n, m, c: (0, c)),
                pl.BlockSpec((2, TILE_C), lambda n, m, c: (0, c)),
            ],
            out_specs=pl.BlockSpec((1, TILE_M, TILE_C),
                                   lambda n, m, c: (n, m, c)),
        ),
        compiler_params=pltpu.CompilerParams(
            dimension_semantics=("parallel", "parallel", "parallel"),
            vmem_limit_bytes=32 * 1024 * 1024,
        ),
    )(patches, w2d, sb)

    out = out[:, :M, :Cout].reshape(N, Ho, Wo, Cout)                 # strip pads
    return jnp.transpose(out, (0, 3, 1, 2))                          # NCHW


def _reference(x, weight, gamma, beta, running_mean, running_var, *,
               stride=1, padding=0, eps=1e-5, relu=True, bn=True):
    y = jax.lax.conv_general_dilated(
        x, weight, window_strides=(stride, stride),
        padding=((padding, padding), (padding, padding)),
        dimension_numbers=("NCHW", "OIHW", "NCHW"),
        preferred_element_type=jnp.float32)
    if bn:
        scale = gamma / jnp.sqrt(running_var + eps)
        bias = beta - running_mean * scale
        y = y * scale[None, :, None, None] + bias[None, :, None, None]
    if relu:
        y = jnp.maximum(y, 0.0)
    return y


if __name__ == "__main__":
    key = jax.random.PRNGKey(0)
    k1, k2, k3, k4, k5, k6 = jax.random.split(key, 6)

    # BasicConv(in_planes=4, out_planes=8, kernel_size=3, stride=1, padding=1,
    #           bias=False, bn=True, relu=True)
    N, Cin, H, W = 2, 4, 16, 16
    Cout, KH, KW = 8, 3, 3

    x = jax.random.normal(k1, (N, Cin, H, W), dtype=jnp.float32)
    weight = jax.random.normal(k2, (Cout, Cin, KH, KW), dtype=jnp.float32) * 0.1
    gamma = jax.random.uniform(k3, (Cout,), jnp.float32, 0.5, 1.5)
    beta = jax.random.normal(k4, (Cout,), dtype=jnp.float32) * 0.1
    running_mean = jax.random.normal(k5, (Cout,), dtype=jnp.float32) * 0.1
    running_var = jax.random.uniform(k6, (Cout,), jnp.float32, 0.5, 1.5)

    # f32 compute path vs f32 XLA reference (tight tolerance).
    out_f32 = basic_conv(x, weight, gamma, beta, running_mean, running_var,
                         stride=1, padding=1, relu=True, bn=True,
                         compute_dtype=jnp.float32)
    out_f32 = jax.block_until_ready(out_f32)
    ref_f32 = _reference(x, weight, gamma, beta, running_mean, running_var,
                         stride=1, padding=1, relu=True, bn=True)
    assert out_f32.shape == (N, Cout, H, W)
    assert jnp.allclose(out_f32, ref_f32, atol=1e-4, rtol=1e-4), \
        "f32 mismatch vs reference"

    # bf16 MXU path (default) vs a reference fed bf16-rounded inputs, so the
    # only remaining difference is f32 accumulation order.
    out_bf16 = basic_conv(x, weight, gamma, beta, running_mean, running_var,
                          stride=1, padding=1, relu=True, bn=True,
                          compute_dtype=jnp.bfloat16)
    out_bf16 = jax.block_until_ready(out_bf16)
    x_b = x.astype(jnp.bfloat16).astype(jnp.float32)
    w_b = weight.astype(jnp.bfloat16).astype(jnp.float32)
    ref_bf16 = _reference(x_b, w_b, gamma, beta, running_mean, running_var,
                          stride=1, padding=1, relu=True, bn=True)
    assert jnp.allclose(out_bf16, ref_bf16, atol=1e-3, rtol=1e-3), \
        "bf16 mismatch vs reference"

    print("KERNEL_OK")
</pallas_src>

<mosaic_0001>
module attributes {stable_mosaic.version = 11 : i64} {
  func.func @_conv_bn_relu_kernel(%arg0: i32, %arg1: i32, %arg2: i32, %arg3: memref<1x128x128xf32, #tpu.memory_space<vmem>>, %arg4: memref<128x128xf32, #tpu.memory_space<vmem>>, %arg5: memref<2x128xf32, #tpu.memory_space<vmem>>, %arg6: memref<1x128x128xf32, #tpu.memory_space<vmem>>) attributes {dimension_semantics = [#tpu.dimension_semantics<parallel>, #tpu.dimension_semantics<parallel>, #tpu.dimension_semantics<parallel>], iteration_bounds = array<i64: 2, 2, 1>, scalar_prefetch = 0 : i64, scratch_operands = 0 : i64, tpu.core_type = #tpu.core_type<tc>, window_params = [{transform_indices = @transform_0, window_bounds = array<i64: 1, 128, 128>}, {transform_indices = @transform_1, window_bounds = array<i64: 128, 128>}, {transform_indices = @transform_2, window_bounds = array<i64: 2, 128>}, {transform_indices = @transform_3, window_bounds = array<i64: 1, 128, 128>}]} {
    %c0 = arith.constant 0 : index
    %c0_0 = arith.constant 0 : index
    %c0_1 = arith.constant 0 : index
    %0 = vector.load %arg3[%c0, %c0_0, %c0_1] : memref<1x128x128xf32, #tpu.memory_space<vmem>>, vector<1x128x128xf32>
    %1 = vector.shape_cast %0 : vector<1x128x128xf32> to vector<128x128xf32>
    %c0_2 = arith.constant 0 : index
    %c0_3 = arith.constant 0 : index
    %2 = vector.load %arg4[%c0_2, %c0_3] : memref<128x128xf32, #tpu.memory_space<vmem>>, vector<128x128xf32>
    %cst = arith.constant dense<0.000000e+00> : vector<128x128xf32>
    %3 = tpu.matmul %1, %2, %cst {dimension_numbers = #tpu.dot_dimension_numbers<[1], [0], [0], [1], [0, 0, 1, 1], [], []>} : vector<128x128xf32>, vector<128x128xf32>, vector<128x128xf32> -> vector<128x128xf32>
    %c0_4 = arith.constant 0 : index
    %c0_5 = arith.constant 0 : index
    %4 = vector.load %arg5[%c0_4, %c0_5] : memref<2x128xf32, #tpu.memory_space<vmem>>, vector<1x128xf32>
    %5 = vector.broadcast %4 : vector<1x128xf32> to vector<128x128xf32>
    %6 = arith.mulf %3, %5 : vector<128x128xf32>
    %c1 = arith.constant 1 : index
    %c0_6 = arith.constant 0 : index
    %7 = vector.load %arg5[%c1, %c0_6] : memref<2x128xf32, #tpu.memory_space<vmem>>, vector<1x128xf32>
    %8 = vector.broadcast %7 : vector<1x128xf32> to vector<128x128xf32>
    %9 = arith.addf %6, %8 : vector<128x128xf32>
    %cst_7 = arith.constant 0.000000e+00 : f32
    %10 = vector.broadcast %cst_7 : f32 to vector<128x128xf32>
    %11 = arith.maximumf %9, %10 : vector<128x128xf32>
    %c0_8 = arith.constant 0 : index
    %c0_9 = arith.constant 0 : index
    %c0_10 = arith.constant 0 : index
    %12 = vector.load %arg6[%c0_8, %c0_9, %c0_10] : memref<1x128x128xf32, #tpu.memory_space<vmem>>, vector<1x128x128xf32>
    %13 = vector.shape_cast %12 : vector<1x128x128xf32> to vector<128x128xf32>
    %14 = vector.shape_cast %11 : vector<128x128xf32> to vector<1x128x128xf32>
    tpu.vector_store %arg6[%c0_8, %c0_9, %c0_10], %14 {strides = array<i32>} : memref<1x128x128xf32, #tpu.memory_space<vmem>>, vector<1x128x128xf32>,
    return
  }
  func.func @transform_0(%arg0: i32, %arg1: i32, %arg2: i32) -> (i32, i32, i32) {
    %c0_i32 = arith.constant 0 : i32
    %c0_i32_0 = arith.constant 0 : i32
    return %arg0, %arg1, %c0_i32 : i32, i32, i32
  }
  func.func @transform_1(%arg0: i32, %arg1: i32, %arg2: i32) -> (i32, i32) {
    %c0_i32 = arith.constant 0 : i32
    %c0_i32_0 = arith.constant 0 : i32
    return %c0_i32, %arg2 : i32, i32
  }
  func.func @transform_2(%arg0: i32, %arg1: i32, %arg2: i32) -> (i32, i32) {
    %c0_i32 = arith.constant 0 : i32
    %c0_i32_0 = arith.constant 0 : i32
    return %c0_i32, %arg2 : i32, i32
  }
  func.func @transform_3(%arg0: i32, %arg1: i32, %arg2: i32) -> (i32, i32, i32) {
    %c0_i32 = arith.constant 0 : i32
    return %arg0, %arg1, %arg2 : i32, i32, i32
  }
}

</mosaic_0001>

<bundles_post_ra>
// kernel: tpu_custom_call.1
= control target key start
LH: loop header
LB: loop body
LE: loop exit
PB: predicated region body
PF: predicated region fallthrough
CT: control target
= control target key end

     0   :  { %s1421_s0 = inlined_call_operand.hbm [shape: f32[2,256,128], index: 0, kind: input, shape index: {}]   ;;  %s1422_s1 = inlined_call_operand.hbm [shape: f32[128,128], index: 1, kind: input, shape index: {}]   ;;  %s1423_s2 = inlined_call_operand.vmem [shape: f32[2,128], index: 2, kind: input, shape index: {}]   ;;  %s1424_s3 = inlined_call_operand.hbm [shape: f32[2,256,128], index: 3, kind: output, shape index: {}]  }
   0x1   :  { %1435 = sst [smem:[#allocation15_spill]] %s1422_s1 }
   0x2   :  { %8 = vsyncpa [#allocation3], 0 }
   0x3   :  { %10 = vsyncpa [#allocation3 + $0x1], 0 }
   0x4   :  { %11 = vsyncpa [#allocation6], 0 }
   0x5   :  { %12 = vsyncpa [#allocation4], 0 }
   0x6   :  { %14 = vsyncpa [#allocation4 + $0x1], 0  ;;  %s1086_s12 = smov 0   ;;  %s1088_s13 = smov 0  }
   0x7   :  { %s1090_s14 = smov 0   ;;  %s1092_s15 = smov 0  }
   0x8   :  { %s1094_s16 = smov 0   ;;  %s1096_s17 = smov 0  }
   0x9   :  { %s1098_s18 = smov 0   ;;  %s1100_s19 = smov 0  }
   0xa LB: > { %1436 = sst [smem:[#allocation11_spill]] %s1049_s17  ;;  %s646_s20 = sadd.s32 4294967295, %s1057_s19   ;;  %s1057_s19 = sphi %s1100_s19, %s20_s19   ;;  %s1053_s18 = sphi %s1098_s18, %s1465_s18   ;;  %s1049_s17 = sphi %s1096_s17, %s1459_s17   ;;  %s1045_s16 = sphi %s1094_s16, %s1464_s16   ;;  %s1041_s15 = sphi %s1092_s15, %s1458_s15   ;;  %s1037_s14 = sphi %s1090_s14, %s1463_s14   ;;  %s1033_s13 = sphi %s1088_s13, %s1462_s13   ;;  %s1029_s12 = sphi %s1086_s12, %s1461_s12  }
   0xb   : > { %s647_s21 = sadd.s32 4294967294, %s1057_s19   ;;  %p61_p0 = scmp.ne.s32.totalorder %s1033_s13, %s1029_s12 }
   0xc   : > { %p1130_p1 = scmp.eq.s32.totalorder %s646_s20, 0  ;;  %p1134_p2 = scmp.eq.s32.totalorder %s646_s20, 3 }
   0xd   : > { %p147_p3 = scmp.eq.s32.totalorder %s647_s21, 3  ;;  %p648_p5 = scmp.ge.s32.totalorder %s1057_s19, 1 }
   0xe   : > { %s1437_s22 = scalar_select %p1130_p1, 1, 0 }
   0xf   : > { %s1438_s23 = scalar_select %p1134_p2, 1, 0 }
  0x10   : > { %p1140_p4 = por %p1130_p1, %p61_p0  ;;  %p1145_p6 = por %p147_p3, %p61_p0 }
  0x11   : > { %p154_p7 = scmp.lt.s32.totalorder %s1057_s19, 5  ;;  %s1059_s27 = smov [#allocation5]  }
  0x12   : > { %s1439_s24 = scalar_select %p1140_p4, 1, 0 }
  0x13   : > { %s1440_s25 = scalar_select %p1145_p6, 1, 0 }
  0x14   : > { %p1150_p8 = pnand %p648_p5, %p154_p7  ;;  %s168_s28 = sshll.u32 %s1059_s27, 4  ;;  %s169_s28 = int_to_ptr.vmem [resolvable:$true] %s168_s28 }
  0x15   : > { %1441 = sst [smem:[#allocation12_spill]] %s1440_s25  ;;  %s1444_s1 = sld [smem:[#allocation15_spill]] }
  0x16   : > { %s1442_s26 = scalar_select %p1150_p8, 1, 0 }
  0x17   : > { %p812_p9 = pneg %p1150_p8 }
  0x19   : > { %p1158_p10 = pnand %p812_p9, %p1130_p1 }
  0x1b   : > { %s897_s5 = scalar_lea.hbm %s1444_s1, 2048  ;;  %p899_p12 = pneg %p1158_p10 }
  0x1c   : > { %p898_p11 = scmp.ne.s32.totalorder %s1444_s1, %s897_s5  ;;  %p904_p3 = scmp.lt.u32.totalorder %s897_s5, %s1444_s1 }
  0x1e   : > { %p900_p13 = pnand %p899_p12, %p898_p11 }
  0x20   : > { %p901_p0 = pneg %p900_p13 }
  0x22   : > { %p906_p5 = pnand %p904_p3, %p901_p0 }
  0x24   : > { %909 = shalt.err (!%p906_p5)
}
  0x25   : > { %s910_s10 = scalar_lea.vmem %s169_s28, 2048  ;;  %p918_p1 = scmp.lt.s32.totalorder %s169_s28, %s169_s28 }
  0x26   : > { %p911_p7 = scmp.ne.s32.totalorder %s169_s28, %s910_s10  ;;  %p919_p4 = scmp.lt.s32.totalorder %s910_s10, %s910_s10 }
  0x28   : > { %p913_p9 = pnand %p911_p7, %p899_p12  ;;  %p920_p8 = por %p919_p4, %p918_p1 }
  0x2a   : > { %p914_p6 = pneg %p913_p9 }
  0x2c   : > { %p921_p2 = pnand %p920_p8, %p914_p6 }
  0x2e   : > { %924 = shalt.err (!%p921_p2)
}
  0x2f   : > { %s1429_s11 = smov 128   ;;  %s1430_s20 = smov 8  }
  0x30   : > { %815 = dma.hbm_to_vmem [thread:$0]  (!%p1158_p10), %s1444_s1, 2048, %s169_s28, [#allocation6], %s1429_s11, %s1429_s11, %s1430_s20  }
  0x31   : > { %s35_s30 = sadd.s32 1, %s1049_s17  ;;  %s39_s4 = sadd.s32 1, %s1053_s18 }
  0x32   : > { %p37_p1 = scmp.ge.s32.totalorder %s35_s30, 2  ;;  %s48_s5 = sadd.s32 1, %s1037_s14 }
  0x33   : > { %p55_p2 = scmp.ne.s32.totalorder %s1037_s14, %s1033_s13  ;;  %p56_p4 = scmp.eq.s32.totalorder %s1057_s19, 0 }
  0x34   : > { %s1467_s30 = smov (%p37_p1, %s35_s30), 0  ;;  %s1469_s4 = smov (!%p37_p1, %s39_s4), %s1053_s18 }
  0x35   : > { %1445 = sst [smem:[#allocation13_spill]] %s1467_s30  ;;  %s44_s29 = ssub.s32 %s1049_s17, %s1467_s30 }
  0x36   : > { %p41_p6 = scmp.ge.s32.totalorder %s1469_s4, 2  ;;  %p1446_p8 = scmp.ne.s32.totalorder %s1438_s23, 0 }
  0x37   : > { %p1198_p10 = por %p56_p4, %p55_p2  ;;  %p825_p12 = scmp.lt.s32.totalorder %s1057_s19, 4 }
  0x38   : > { %p1194_p11 = por %p1446_p8, %p55_p2  ;;  %s1471_s4 = smov (%p41_p6, %s1469_s4), 0 }
  0x39   : > { %1449 = sst [smem:[#allocation14_spill]] %s1471_s4  ;;  %s189_s7 = sand.u32 1, %s1037_s14  }
  0x3a   : > { %s653_s8 = sshll.u32 %s1049_s17, 4  ;;  %s43_s9 = ssub.s32 %s1053_s18, %s1471_s4 }
  0x3b   : > { %s45_s10 = sor.u32 %s44_s29, %s43_s9  ;;  %s652_s21 = sshll.u32 %s189_s7, 7 }
  0x3c   : > { %p46_p13 = scmp.eq.s32.totalorder %s45_s10, 0  ;;  %s654_s23 = sshll.u32 %s1053_s18, 5 }
  0x3d   : > { %s193_s27 = scalar_lea.vmem [#allocation2], %s652_s21  ;;  %s199_s1 = sadd.s32 %s654_s23, %s653_s8 }
  0x3e   : > { %s202_s11 = sshll.u32 %s193_s27, 4  ;;  %s655_s30 = sshll.u32 %s199_s1, 7  ;;  %s1213_s11 = int_to_ptr.vmem [resolvable:$true] %s202_s11 }
  0x3f   : > { %s1211_s20 = scalar_select %p46_p13, %s1037_s14, %s48_s5  }
  0x40   : > { %p1219_p0 = pnand %p825_p12, %p1198_p10  ;;  %s1226_s29 = scalar_lea.hbm %s1421_s0, %s655_s30 }
  0x41   : > { %s1228_s5 = scalar_lea.sflag [#allocation3], %s189_s7  ;;  %s925_s1 = scalar_lea.hbm %s1226_s29, 2048 }
  0x42   : > { %p926_p3 = scmp.ne.s32.totalorder %s1226_s29, %s925_s1  ;;  %p927_p5 = pneg %p1219_p0 }
  0x43   : > { %s930_s4 = scalar_lea.hbm %s1421_s0, 8192  ;;  %p931_p1 = scmp.lt.u32.totalorder %s1226_s29, %s1421_s0 }
  0x44   : > { %p928_p7 = pnand %p927_p5, %p926_p3  ;;  %p932_p2 = scmp.lt.u32.totalorder %s930_s4, %s925_s1 }
  0x45   : > { %p934_p6 = scmp.lt.u32.totalorder %s925_s1, %s1226_s29 }
  0x46   : > { %p929_p9 = pneg %p928_p7  ;;  %p933_p4 = por %p932_p2, %p931_p1 }
  0x48   : > { %p935_p8 = por %p934_p6, %p933_p4 }
  0x4a   : > { %p936_p10 = pnand %p935_p8, %p929_p9 }
  0x4c   : > { %939 = shalt.err (!%p936_p10)
}
  0x4d   : > { %s940_s7 = scalar_lea.vmem %s1213_s11, 2048  ;;  %s1062_s9 = smov [#allocation2]  }
  0x4e   : > { %p941_p12 = scmp.ne.s32.totalorder %s1213_s11, %s940_s7  ;;  %s945_s10 = sshll.u32 %s1062_s9, 4  ;;  %s946_s10 = int_to_ptr.vmem [resolvable:$false] %s945_s10 }
  0x4f   : > { %s947_s21 = scalar_lea.vmem %s946_s10, 4096  ;;  %p948_p7 = scmp.lt.s32.totalorder %s1213_s11, %s946_s10 }
  0x50   : > { %p943_p13 = pnand %p941_p12, %p927_p5  ;;  %p949_p1 = scmp.lt.s32.totalorder %s947_s21, %s940_s7 }
  0x52   : > { %p944_p3 = pneg %p943_p13  ;;  %p950_p2 = por %p949_p1, %p948_p7 }
  0x54   : > { %p951_p4 = pnand %p950_p2, %p944_p3 }
  0x56   : > { %954 = shalt.err (!%p951_p4)
}
  0x57   : > { %s1451_s23 = smov 8   ;;  %s1452_s27 = smov 128  }
  0x58   : > { %819 = dma.hbm_to_vmem [thread:$0]  (!%p1219_p0), %s1226_s29, 2048, %s1213_s11, %s1228_s5, %s1452_s27, %s1452_s27, %s1451_s23  }
  0x59   : > { %p1453_p5 = scmp.ne.s32.totalorder %s1442_s26, 0 }
  0x5a   : > { %s1262_s1 = sand.u32 (!%p1453_p5), 1, %s1033_s13   ;;  %p1454_p9 = scmp.ne.s32.totalorder (!%p1453_p5), %s1439_s24, 0 }
  0x5b   : > { %214 = sbr.rel (%p1453_p5) target bundleno = 383 (0x17f), region = 32  ;;  %s657_s28 = sshll.u32 (!%p1453_p5), %s1262_s1, 7 }
  0x5c   : > { %s217_s17 = scalar_lea.sflag (!%p1453_p5), [#allocation3], %s1262_s1  ;;  %s1268_s25 = scalar_lea.vmem (!%p1453_p5), [#allocation2], %s657_s28 }
  0x62   : > { %1016 = dma.done.wait (%p1454_p9), %s217_s17, 2048  }
  0x63   : > { %1018 = vsyncadd (%p1454_p9), %s217_s17, 4294965248  ;;  %p1455_p0 = scmp.ne.s32.totalorder %s1437_s22, 0 }
  0x65   : > { %1020 = dma.done.wait (%p1455_p0), [#allocation6], 2048  }
  0x66   : > { %1022 = vsyncadd (%p1455_p0), [#allocation6], 4294965248  ;;  %v273_v0 = vld [vmem:[#allocation5] sm:$0xff]  ;;  %v274_v1 = vld [vmem:[#allocation5 + $0x8] sm:$0xff]  ;;  %s1318_s29 = scalar_lea.vmem [#allocation7], %s657_s28  ;;  %s663_s5 = sshll.u32 %s1041_s15, 4 }
  0x67   : > { %v275_v2 = vld [vmem:[#allocation5 + $0x10] sm:$0xff]  ;;  %v756_v3 = vpack.c.bf16 %v274_v1, %v273_v0  ;;  %v276_v4 = vld [vmem:[#allocation5 + $0x18] sm:$0xff]  ;;  %v277_v6 = vld [vmem:[#allocation5 + $0x20] sm:$0xff]  ;;  %s664_s4 = sshll.u32 %s1045_s16, 5  ;;  %s525_s30 = sshll.u32 %s1318_s29, 4  ;;  %s1363_s30 = int_to_ptr.vmem [resolvable:$true] %s525_s30 }
  0x68   : > { %v760_v5 = vpack.c.bf16 %v276_v4, %v275_v2  ;;  %v278_v7 = vld [vmem:[#allocation5 + $0x28] sm:$0xff]  ;;  %v257_v9 = vld [vmem:[%s1268_s25] sm:$0xff]  ;;  %v279_v11 = vld [vmem:[#allocation5 + $0x30] sm:$0xff]  ;;  %s1338_s15 = sadd.s32 %s664_s4, %s663_s5  ;;  %s509_s10 = scalar_lea.sflag [#allocation4], %s1262_s1 }
  0x69   : > { %757 = vmatprep.subr.bf16.mxu0 %v756_v3  ;;  %788 = vmatprep.subr.bf16.mxu1 %v756_v3  ;;  %v764_v8 = vpack.c.bf16 %v278_v7, %v277_v6  ;;  %v265_v10 = vld [vmem:[%s1268_s25 + $0x40] sm:$0xff]  ;;  %v280_v12 = vld [vmem:[#allocation5 + $0x38] sm:$0xff]  ;;  %v282_v15 = vld [vmem:[#allocation5 + $0x48] sm:$0xff]  ;;  %s665_s16 = sshll.u32 %s1338_s15, 7  ;;  %s955_s21 = scalar_lea.vmem %s1363_s30, 2048 }
  0x6a   : > { %759 = vmatpush3.bf16.msra.mxu0 %v756_v3  ;;  %796 = vmatpush3.bf16.msra.mxu1 %v756_v3  ;;  %v768_v13 = vpack.c.bf16 %v280_v12, %v279_v11  ;;  %v281_v14 = vld [vmem:[#allocation5 + $0x40] sm:$0xff]  ;;  %v283_v17 = vld [vmem:[#allocation5 + $0x50] sm:$0xff]  ;;  %v284_v18 = vld [vmem:[#allocation5 + $0x58] sm:$0xff]  ;;  %s1361_s9 = scalar_lea.hbm %s1424_s3, %s665_s16  ;;  %p956_p6 = scmp.ne.s32.totalorder %s1363_s30, %s955_s21 }
  0x6b   : > { %761 = vmatprep.subr.bf16.mxu0 %v760_v5  ;;  %789 = vmatprep.subr.bf16.mxu1 %v760_v5  ;;  %v772_v16 = vpack.c.bf16 %v282_v15, %v281_v14  ;;  %v776_v19 = vpack.c.bf16 %v284_v18, %v283_v17  ;;  %v285_v20 = vld [vmem:[#allocation5 + $0x60] sm:$0xff]  ;;  %v286_v21 = vld [vmem:[#allocation5 + $0x68] sm:$0xff]  ;;  %v287_v23 = vld [vmem:[#allocation5 + $0x70] sm:$0xff]  ;;  %s1063_s23 = smov [#allocation7]  }
  0x6c   : > { %732 = vmatprep.mubr.f32.mxu0 %v257_v9  ;;  %744 = vmatprep.mubr.f32.mxu1 %v265_v10  ;;  %v780_v22 = vpack.c.bf16 %v286_v21, %v285_v20  ;;  %v288_v24 = vld [vmem:[#allocation5 + $0x78] sm:$0xff]  ;;  %v258_v26 = vld [vmem:[%s1268_s25 + $0x8] sm:$0xff]  ;;  %v259_v28 = vld [vmem:[%s1268_s25 + $0x10] sm:$0xff]  ;;  %p957_p8 = pnand %p956_p6, %p1194_p11  ;;  %s959_s27 = sshll.u32 %s1063_s23, 4  ;;  %s960_s27 = int_to_ptr.vmem [resolvable:$false] %s959_s27 }
  0x6d   : > { %v784_v25 = vpack.c.bf16 %v288_v24, %v287_v23  ;;  %v266_v27 = vld [vmem:[%s1268_s25 + $0x48] sm:$0xff]  ;;  %v267_v29 = vld [vmem:[%s1268_s25 + $0x50] sm:$0xff]  ;;  %v260_v30 = vld [vmem:[%s1268_s25 + $0x18] sm:$0xff]  ;;  %s961_s28 = scalar_lea.vmem %s960_s27, 4096  ;;  %p962_p12 = scmp.lt.s32.totalorder %s1363_s30, %s960_s27 }
  0x6e   : > { %763 = vmatpush3.bf16.msra.mxu0 %v760_v5  ;;  %797 = vmatpush3.bf16.msra.mxu1 %v760_v5  ;;  %v268_v31 = vld [vmem:[%s1268_s25 + $0x58] sm:$0xff]  ;;  %v261_v32 = vld [vmem:[%s1268_s25 + $0x20] sm:$0xff]  ;;  %v262_v34 = vld [vmem:[%s1268_s25 + $0x28] sm:$0xff]  ;;  %p958_p10 = pneg %p957_p8  ;;  %p963_p13 = scmp.lt.s32.totalorder %s961_s28, %s955_s21 }
  0x6f   : > { %765 = vmatprep.subr.bf16.mxu0 %v764_v8  ;;  %790 = vmatprep.subr.bf16.mxu1 %v764_v8  ;;  %v269_v33 = vld [vmem:[%s1268_s25 + $0x60] sm:$0xff]  ;;  %v270_v35 = vld [vmem:[%s1268_s25 + $0x68] sm:$0xff]  ;;  %v263_v36 = vld [vmem:[%s1268_s25 + $0x30] sm:$0xff] }
  0x70   : > { %v271_v37 = vld [vmem:[%s1268_s25 + $0x70] sm:$0xff]  ;;  %v264_v38 = vld [vmem:[%s1268_s25 + $0x38] sm:$0xff]  ;;  %v1297_v40 = vld [vmem:[%s1423_s2] ss:$0 sm:$0xff]  ;;  %p964_p3 = por %p963_p13, %p962_p12 }
  0x71   : > { %v272_v39 = vld [vmem:[%s1268_s25 + $0x78] sm:$0xff]  ;;  %v1302_v42 = vld [vmem:[%s1423_s2 + $0x1] ss:$0 sm:$0xff] }
  0x72   : > { %767 = vmatpush3.bf16.msra.mxu0 %v764_v8  ;;  %798 = vmatpush3.bf16.msra.mxu1 %v764_v8  ;;  %p965_p7 = pnand %p964_p3, %p958_p10 }
  0x73   : > { %769 = vmatprep.subr.bf16.mxu0 %v768_v13  ;;  %791 = vmatprep.subr.bf16.mxu1 %v768_v13 }
  0x76   : > { %771 = vmatpush3.bf16.msra.mxu0 %v768_v13  ;;  %799 = vmatpush3.bf16.msra.mxu1 %v768_v13 }
  0x77   : > { %773 = vmatprep.subr.bf16.mxu0 %v772_v16  ;;  %792 = vmatprep.subr.bf16.mxu1 %v772_v16 }
  0x7a   : > { %775 = vmatpush3.bf16.msra.mxu0 %v772_v16  ;;  %800 = vmatpush3.bf16.msra.mxu1 %v772_v16 }
  0x7b   : > { %777 = vmatprep.subr.bf16.mxu0 %v776_v19  ;;  %793 = vmatprep.subr.bf16.mxu1 %v776_v19 }
  0x7e   : > { %779 = vmatpush3.bf16.msra.mxu0 %v776_v19  ;;  %801 = vmatpush3.bf16.msra.mxu1 %v776_v19 }
  0x7f   : > { %781 = vmatprep.subr.bf16.mxu0 %v780_v22  ;;  %794 = vmatprep.subr.bf16.mxu1 %v780_v22 }
  0x82   : > { %783 = vmatpush3.bf16.msra.mxu0 %v780_v22  ;;  %802 = vmatpush3.bf16.msra.mxu1 %v780_v22 }
  0x83   : > { %785 = vmatprep.subr.bf16.mxu0 %v784_v25  ;;  %795 = vmatprep.subr.bf16.mxu1 %v784_v25 }
  0x86   : > { %787 = vmatpush3.bf16.msra.mxu0 %v784_v25  ;;  %803 = vmatpush3.bf16.msra.mxu1 %v784_v25 }
  0x89   : > { %733 = vmatmul.mubr.f32.vlgmr.msra.gmra.mrb[0].mxu0 %v258_v26  ;;  %745 = vmatmul.mubr.f32.vlgmr.msra.gmra.mrb[0].mxu1 %v266_v27 }
  0x8a   : > { %735 = vmatprep.mubr.f32.mxu0 %v259_v28  ;;  %747 = vmatprep.mubr.f32.mxu1 %v267_v29 }
  0x8d   : > { %736 = vmatmul.mubr.f32.gmra.mrb[2].mxu0 %v260_v30  ;;  %748 = vmatmul.mubr.f32.gmra.mrb[2].mxu1 %v268_v31 }
  0x8e   : > { %738 = vmatprep.mubr.f32.mxu0 %v261_v32  ;;  %750 = vmatprep.mubr.f32.mxu1 %v269_v33 }
  0x91   : > { %739 = vmatmul.mubr.f32.gmra.mrb[4].mxu0 %v262_v34  ;;  %751 = vmatmul.mubr.f32.gmra.mrb[4].mxu1 %v270_v35 }
  0x92   : > { %741 = vmatprep.mubr.f32.mxu0 %v263_v36  ;;  %753 = vmatprep.mubr.f32.mxu1 %v271_v37 }
  0x95   : > { %742 = vmatmul.mubr.f32.gmra.mrb[6].mxu0 %v264_v38  ;;  %754 = vmatmul.mubr.f32.gmra.mrb[6].mxu1 %v272_v39 }
 0x15c   : > { %v734_v41 = vpop.f32.mrb[0].mxu0  ;;  %v746_v43 = vpop.f32.mrb[0].mxu1 }
 0x15d   : > { %v440_v44 = vmul.f32 %v734_v41, %v1297_v40  ;;  %v448_v45 = vmul.f32 %v746_v43, %v1297_v40  ;;  %v355_v46 = vpop.f32.mrb[1].mxu0  ;;  %v395_v47 = vpop.f32.mrb[1].mxu1 }
 0x15e   : > { %v439_v48 = vmul.f32 %v1297_v40, %v355_v46  ;;  %v447_v49 = vmul.f32 %v1297_v40, %v395_v47 }
 0x15f   : > { %v461_v50 = vadd.f32 %v1302_v42, %v440_v44  ;;  %v469_v51 = vadd.f32 %v1302_v42, %v448_v45 }
 0x160   : > { %v460_v52 = vadd.f32 %v1302_v42, %v439_v48  ;;  %v468_v53 = vadd.f32 %v1302_v42, %v447_v49  ;;  %v737_v54 = vpop.f32.mrb[2].mxu0  ;;  %v749_v55 = vpop.f32.mrb[2].mxu1 }
 0x161   : > { %v477_v56 = vmax.f32 %v461_v50, 0.0  ;;  %v485_v57 = vmax.f32 %v469_v51, 0.0  ;;  %v442_v58 = vmul.f32 %v737_v54, %v1297_v40  ;;  %v450_v59 = vmul.f32 %v749_v55, %v1297_v40  ;;  %v365_v60 = vpop.f32.mrb[3].mxu0  ;;  %v405_v61 = vpop.f32.mrb[3].mxu1 }
 0x162   : > { %v476_v62 = vmax.f32 %v460_v52, 0.0  ;;  %v484_v63 = vmax.f32 %v468_v53, 0.0  ;;  %v441_v0 = vmul.f32 %v1297_v40, %v365_v60  ;;  %v449_v1 = vmul.f32 %v1297_v40, %v405_v61 }
 0x163   : > { %493 = vst [vmem:[%s1318_s29 + $0x8] sm:$0xff] %v477_v56  ;;  %501 = vst [vmem:[%s1318_s29 + $0x48] sm:$0xff] %v485_v57  ;;  %v463_v2 = vadd.f32 %v1302_v42, %v442_v58  ;;  %v471_v3 = vadd.f32 %v1302_v42, %v450_v59 }
 0x164   : > { %492 = vst [vmem:[%s1318_s29] sm:$0xff] %v476_v62  ;;  %500 = vst [vmem:[%s1318_s29 + $0x40] sm:$0xff] %v484_v63  ;;  %v462_v4 = vadd.f32 %v1302_v42, %v441_v0  ;;  %v470_v5 = vadd.f32 %v1302_v42, %v449_v1  ;;  %v740_v6 = vpop.f32.mrb[4].mxu0  ;;  %v752_v7 = vpop.f32.mrb[4].mxu1 }
 0x165   : > { %v479_v8 = vmax.f32 %v463_v2, 0.0  ;;  %v487_v9 = vmax.f32 %v471_v3, 0.0  ;;  %v444_v10 = vmul.f32 %v740_v6, %v1297_v40  ;;  %v452_v11 = vmul.f32 %v752_v7, %v1297_v40  ;;  %v375_v12 = vpop.f32.mrb[5].mxu0  ;;  %v415_v13 = vpop.f32.mrb[5].mxu1 }
 0x166   : > { %v478_v14 = vmax.f32 %v462_v4, 0.0  ;;  %v486_v15 = vmax.f32 %v470_v5, 0.0  ;;  %v443_v16 = vmul.f32 %v1297_v40, %v375_v12  ;;  %v451_v17 = vmul.f32 %v1297_v40, %v415_v13 }
 0x167   : > { %495 = vst [vmem:[%s1318_s29 + $0x18] sm:$0xff] %v479_v8  ;;  %503 = vst [vmem:[%s1318_s29 + $0x58] sm:$0xff] %v487_v9  ;;  %v465_v18 = vadd.f32 %v1302_v42, %v444_v10  ;;  %v473_v19 = vadd.f32 %v1302_v42, %v452_v11 }
 0x168   : > { %494 = vst [vmem:[%s1318_s29 + $0x10] sm:$0xff] %v478_v14  ;;  %502 = vst [vmem:[%s1318_s29 + $0x50] sm:$0xff] %v486_v15  ;;  %v464_v20 = vadd.f32 %v1302_v42, %v443_v16  ;;  %v472_v21 = vadd.f32 %v1302_v42, %v451_v17  ;;  %v743_v22 = vpop.f32.mrb[6].mxu0  ;;  %v755_v23 = vpop.f32.mrb[6].mxu1 }
 0x169   : > { %v481_v24 = vmax.f32 %v465_v18, 0.0  ;;  %v489_v25 = vmax.f32 %v473_v19, 0.0  ;;  %v446_v26 = vmul.f32 %v743_v22, %v1297_v40  ;;  %v454_v27 = vmul.f32 %v755_v23, %v1297_v40  ;;  %v385_v28 = vpop.f32.mrb[7].mxu0  ;;  %v425_v29 = vpop.f32.mrb[7].mxu1 }
 0x16a   : > { %v480_v30 = vmax.f32 %v464_v20, 0.0  ;;  %v488_v31 = vmax.f32 %v472_v21, 0.0  ;;  %v445_v32 = vmul.f32 %v1297_v40, %v385_v28  ;;  %v453_v33 = vmul.f32 %v1297_v40, %v425_v29 }
 0x16b   : > { %497 = vst [vmem:[%s1318_s29 + $0x28] sm:$0xff] %v481_v24  ;;  %505 = vst [vmem:[%s1318_s29 + $0x68] sm:$0xff] %v489_v25  ;;  %v467_v34 = vadd.f32 %v1302_v42, %v446_v26  ;;  %v475_v35 = vadd.f32 %v1302_v42, %v454_v27 }
 0x16c   : > { %496 = vst [vmem:[%s1318_s29 + $0x20] sm:$0xff] %v480_v30  ;;  %504 = vst [vmem:[%s1318_s29 + $0x60] sm:$0xff] %v488_v31  ;;  %v466_v36 = vadd.f32 %v1302_v42, %v445_v32  ;;  %v474_v37 = vadd.f32 %v1302_v42, %v453_v33 }
 0x16d   : > { %v483_v38 = vmax.f32 %v467_v34, 0.0  ;;  %v491_v39 = vmax.f32 %v475_v35, 0.0 }
 0x16e   : > { %v482_v40 = vmax.f32 %v466_v36, 0.0  ;;  %v490_v41 = vmax.f32 %v474_v37, 0.0 }
 0x16f   : > { %499 = vst [vmem:[%s1318_s29 + $0x38] sm:$0xff] %v483_v38  ;;  %507 = vst [vmem:[%s1318_s29 + $0x78] sm:$0xff] %v491_v39 }
 0x170   : > { %498 = vst [vmem:[%s1318_s29 + $0x30] sm:$0xff] %v482_v40  ;;  %506 = vst [vmem:[%s1318_s29 + $0x70] sm:$0xff] %v490_v41 }
 0x171   : > { %968 = shalt.err (!%p965_p7)
}
 0x172   : > { %s969_s17 = scalar_lea.hbm %s1361_s9, 2048  ;;  %s973_s24 = scalar_lea.hbm %s1424_s3, 8192 }
 0x173   : > { %p970_p1 = scmp.ne.s32.totalorder %s1361_s9, %s969_s17  ;;  %p974_p5 = scmp.lt.u32.totalorder %s1361_s9, %s1424_s3 }
 0x174   : > { %p975_p9 = scmp.lt.u32.totalorder %s973_s24, %s969_s17  ;;  %p977_p6 = scmp.lt.u32.totalorder %s969_s17, %s1361_s9 }
 0x175   : > { %p971_p2 = pnand %p970_p1, %p1194_p11 }
 0x176   : > { %p976_p0 = por %p975_p9, %p974_p5 }
 0x177   : > { %p972_p4 = pneg %p971_p2 }
 0x178   : > { %p978_p8 = por %p977_p6, %p976_p0 }
 0x17a   : > { %p979_p10 = pnand %p978_p8, %p972_p4 }
 0x17c   : > { %982 = shalt.err (!%p979_p10)
}
 0x17d   : > { %s1064_s29 = smov 128   ;;  %s1065_s5 = smov 8  }
 0x17e   : > { %810 = dma.vmem_to_hbm [thread:$0]  (%p1194_p11), %s1363_s30, 2048, %s1361_s9, %s509_s10, %s1064_s29, %s1064_s29, %s1065_s5  }
 0x17f PF: > { %s1456_s4 = sld [smem:[#allocation12_spill]]  ;;  %p827_p12 = scmp.ge.s32.totalorder %s1057_s19, 2 }
 0x180   : > { %s540_s15 = sand.u32 1, %s1029_s12  }
 0x181   : > { %s541_s16 = scalar_lea.sflag [#allocation4], %s540_s15 }
 0x185   : > { %p1457_p13 = scmp.ne.s32.totalorder %s1456_s4, 0 }
 0x187   : > { %p821_p3 = pnand %p827_p12, %p1457_p13 }
 0x189   : > { %1024 = dma.done.wait (!%p821_p3), %s541_s16, 2048  }
 0x18a   : > { %1026 = vsyncadd (!%p821_p3), %s541_s16, 4294965248  ;;  %s20_s19 = sadd.s32 1, %s1057_s19   ;;  %s1458_s15 = sld [smem:[#allocation11_spill]] }
 0x18b   : > { %p17_p7 = scmp.ge.s32.totalorder %s20_s19, 6   ;;  %s1459_s17 = sld [smem:[#allocation13_spill]] }
 0x18c   : > { %s1460_s6 = sld [smem:[#allocation14_spill]]  ;;  %s1461_s12 = smov %s1033_s13 }
 0x18d   : > { %s1462_s13 = smov %s1037_s14  ;;  %s1463_s14 = smov %s1211_s20 }
 0x18e   : > { %s1464_s16 = smov %s1053_s18  ;;  %19 = sbr.rel (!%p17_p7) target bundleno = 10 (0xa), region = 85 }
 0x192   : > { %s1465_s18 = smov %s1460_s6 }
 0x195   :  { %546 = vsyncpa [#allocation3], 1 }
 0x196   :  { %548 = vsyncpa [#allocation3 + $0x1], 1 }
 0x197   :  { %549 = vsyncpa [#allocation6], 1 }
 0x198   :  { %550 = vsyncpa [#allocation4], 1 }
 0x199   :  { %552 = vsyncpa [#allocation4 + $0x1], 1 }

</bundles_post_ra>
